<compile_context>
chip_gen: v6e
topology: v6e:2x2x1
jax: 0.10.0
libtpu: 0.0.40
codegen_flags: <defaults>
</compile_context>

<pallas_src>
import jax
import jax.numpy as jnp
from jax.experimental import pallas as pl
from jax.experimental.pallas import tpu as pltpu

NUM_LAYERS = 4


def pgin_kernel(x_ref, a_ref, w1_ref, w2_ref, fold_ref, p_ref, fcw_ref, fcb_ref,
                out_ref):
    bf16 = jnp.bfloat16
    x = x_ref[...]                # [N, F]    bf16 activations
    a_hat = a_ref[...]            # [N, N]    bf16, A + I (folded once at setup)
    fold = fold_ref[...]          # [4F, F]   bf16 stacked identities (4F -> F fold)
    p = p_ref[...]                # [Gp, N]   bf16 one-hot pooling (padded rows = 0)

    def conv_tail(xin, layer):
        # aggregation + self term in one MXU matmul
        h = jnp.dot(a_hat, xin, preferred_element_type=jnp.float32)         # [N, F] f32
        # MLP([F, 2F, 4F], bias=False, plain_last=False): relu after both layers
        h = jnp.maximum(
            jnp.dot(h.astype(bf16), w1_ref[layer],
                    preferred_element_type=jnp.float32), 0.0)               # [N, 2F]
        h = jnp.maximum(
            jnp.dot(h.astype(bf16), w2_ref[layer],
                    preferred_element_type=jnp.float32), 0.0)               # [N, 4F]
        return h

    # First L-1 layers: fold 4F back to F (tiny natural [4F, F] matmul).
    for layer in range(NUM_LAYERS - 1):                 # static unrolled loop
        h4 = conv_tail(x, layer)
        x = jnp.dot(h4.astype(bf16), fold,
                    preferred_element_type=jnp.float32).astype(bf16)        # [N, F]

    # Last layer: pool BEFORE the fold so the fold + fc1 run on Gp rows, not N.
    h4 = conv_tail(x, NUM_LAYERS - 1)                                       # [N, 4F]
    pooled4 = jnp.dot(p, h4.astype(bf16),
                      preferred_element_type=jnp.float32)                   # [Gp, 4F]
    pooled = jnp.dot(pooled4.astype(bf16), fold,
                     preferred_element_type=jnp.float32)                    # [Gp, F]

    # fc1 (Linear with bias, bias/elementwise in f32); dropout == identity (eval)
    logits = jnp.dot(pooled.astype(bf16), fcw_ref[...],
                     preferred_element_type=jnp.float32) + fcb_ref[...]     # [Gp, Cp]

    # log_softmax over dim=1 (padded class columns carry -1e9 bias -> exp == 0)
    m = jnp.max(logits, axis=1, keepdims=True)
    lse = m + jnp.log(jnp.sum(jnp.exp(logits - m), axis=1, keepdims=True))
    out_ref[...] = logits - lse


def _round_up(v, m):
    return ((v + m - 1) // m) * m


def prepare_pgin(x, adj, w1, w2, pool, fc_w, fc_b):
    """One-time setup (outside the per-call jit): fold A+I, build the 4F->F fold
    matrix, cast MXU operands to bf16, and pad only the tiny classifier/output slab."""
    n, f = x.shape
    g = pool.shape[0]
    c = fc_w.shape[1]
    f32, bf16 = jnp.float32, jnp.bfloat16

    # A_hat = A + I, natural size (no node padding needed for whole-array VMEM specs).
    a_hat = (adj + jnp.eye(n, dtype=f32)).astype(bf16)

    # 4F -> F group-sum fold: four stacked FxF identities, natural size.
    fold = jnp.tile(jnp.eye(f, dtype=f32), (4, 1)).astype(bf16)             # [4F, F]

    # Only the classifier/output slab is padded to a lane/sublane-dense (8,128).
    gp = _round_up(max(g, 1), 8)
    cp = _round_up(c, 128)
    pool_p = jnp.pad(pool, ((0, gp - g), (0, 0))).astype(bf16)              # [Gp, N]
    fcw_p = jnp.pad(fc_w, ((0, 0), (0, cp - c))).astype(bf16)               # [F, Cp]
    # Padded class columns get a very negative bias so log-softmax ignores them.
    fcb_p = jnp.pad(fc_b.astype(f32), ((0, 0), (0, cp - c)),
                    constant_values=-1e9)                                   # [1, Cp]

    return (x.astype(bf16), a_hat, w1.astype(bf16), w2.astype(bf16), fold,
            pool_p, fcw_p, fcb_p)


@jax.jit
def pgin_forward(x_b, a_hat, w1_b, w2_b, fold, pool_p, fcw_p, fcb_p):
    n, f = x_b.shape
    num_layers = w1_b.shape[0]
    gp = pool_p.shape[0]
    cp = fcw_p.shape[1]

    flops = (2 * num_layers * (n * n * f + n * f * (2 * f) + n * (2 * f) * (4 * f))
             + 2 * (num_layers - 1) * n * (4 * f) * f
             + 2 * gp * n * (4 * f) + 2 * gp * (4 * f) * f + 2 * gp * f * cp)
    bytes_accessed = int(sum(a.size * a.dtype.itemsize for a in
                             (x_b, a_hat, w1_b, w2_b, fold, pool_p, fcw_p, fcb_p))
                         + gp * cp * 4)

    vmem = pl.BlockSpec(memory_space=pltpu.MemorySpace.VMEM)
    return pl.pallas_call(
        pgin_kernel,
        out_shape=jax.ShapeDtypeStruct((gp, cp), jnp.float32),
        in_specs=[vmem] * 8,
        out_specs=vmem,
        cost_estimate=pl.CostEstimate(flops=int(flops),
                                      transcendentals=int(gp * cp + gp),
                                      bytes_accessed=bytes_accessed),
    )(x_b, a_hat, w1_b, w2_b, fold, pool_p, fcw_p, fcb_p)


def pgin_reference(x, adj, w1, w2, pool, fc_w, fc_b):
    """Plain-JAX reference mirroring the kernel's bf16-MXU / f32-accumulate model
    and op order (last layer pools before the 4F->F fold).
    Note: self-consistent with the kernel, not bit-exact vs. true f32 PyTorch PGIN."""
    n, f = x.shape
    bf16 = jnp.bfloat16
    a_hat = (adj + jnp.eye(n, dtype=jnp.float32)).astype(bf16)
    fold = jnp.tile(jnp.eye(f, dtype=jnp.float32), (4, 1)).astype(bf16)

    def conv_tail(xin, layer):
        h = jnp.dot(a_hat, xin, preferred_element_type=jnp.float32)
        h = jnp.maximum(jnp.dot(h.astype(bf16), w1[layer].astype(bf16),
                                preferred_element_type=jnp.float32), 0.0)
        h = jnp.maximum(jnp.dot(h.astype(bf16), w2[layer].astype(bf16),
                                preferred_element_type=jnp.float32), 0.0)
        return h

    xb = x.astype(bf16)
    for layer in range(NUM_LAYERS - 1):
        xb = jnp.dot(conv_tail(xb, layer).astype(bf16), fold,
                     preferred_element_type=jnp.float32).astype(bf16)
    h4 = conv_tail(xb, NUM_LAYERS - 1)
    pooled4 = jnp.dot(pool.astype(bf16), h4.astype(bf16),
                      preferred_element_type=jnp.float32)
    pooled = jnp.dot(pooled4.astype(bf16), fold, preferred_element_type=jnp.float32)
    logits = jnp.dot(pooled.astype(bf16), fc_w.astype(bf16),
                     preferred_element_type=jnp.float32) + fc_b
    return jax.nn.log_softmax(logits, axis=1)


if __name__ == "__main__":
    N = 32          # total nodes
    F = 16          # num_features
    C = 8           # num_classes
    G = 4           # number of graphs in the batch (N // G nodes each)
    L = NUM_LAYERS

    key = jax.random.PRNGKey(0)
    k = jax.random.split(key, 6)

    # node features
    x = jax.random.normal(k[0], (N, F), jnp.float32)

    # deterministic graph structure: per-graph undirected ring (edge_index -> dense A)
    per = N // G
    src = jnp.arange(N)
    dst = (src % per + 1) % per + (src // per) * per
    adj = jnp.zeros((N, N), jnp.float32).at[
        jnp.concatenate([src, dst]), jnp.concatenate([dst, src])].add(1.0)

    # batch vector -> one-hot pooling matrix P [G, N]
    batch = jnp.repeat(jnp.arange(G), per)
    pool = (batch[None, :] == jnp.arange(G)[:, None]).astype(jnp.float32)

    # deterministic parameter init (no bias in the conv MLPs, bias in fc1)
    w1 = jax.random.normal(k[1], (L, F, 2 * F), jnp.float32) / jnp.sqrt(F)
    w2 = jax.random.normal(k[2], (L, 2 * F, 4 * F), jnp.float32) / jnp.sqrt(2.0 * F)
    fc_w = jax.random.normal(k[3], (F, C), jnp.float32) / jnp.sqrt(F)
    fc_b = jax.random.normal(k[4], (1, C), jnp.float32) * 0.01

    # One-time setup (hoisted constants), then the jitted kernel call.
    prepared = prepare_pgin(x, adj, w1, w2, pool, fc_w, fc_b)
    out_padded = jax.block_until_ready(pgin_forward(*prepared))
    out = out_padded[:G, :C]

    ref = pgin_reference(x, adj, w1, w2, pool, fc_w, fc_b)

    assert out.shape == (G, C)
    assert jnp.allclose(out, ref, rtol=1e-3, atol=1e-3), "mismatch vs. reference"

    print("KERNEL_OK")
</pallas_src>

<mosaic_0001>
module attributes {stable_mosaic.version = 11 : i64} {
  func.func @pgin_kernel(%arg0: memref<32x16xbf16, #tpu.memory_space<vmem>>, %arg1: memref<32x32xbf16, #tpu.memory_space<vmem>>, %arg2: memref<4x16x32xbf16, #tpu.memory_space<vmem>>, %arg3: memref<4x32x64xbf16, #tpu.memory_space<vmem>>, %arg4: memref<64x16xbf16, #tpu.memory_space<vmem>>, %arg5: memref<8x32xbf16, #tpu.memory_space<vmem>>, %arg6: memref<16x128xbf16, #tpu.memory_space<vmem>>, %arg7: memref<1x128xf32, #tpu.memory_space<vmem>>, %arg8: memref<8x128xf32, #tpu.memory_space<vmem>>) attributes {dimension_semantics = [], scalar_prefetch = 0 : i64, scratch_operands = 0 : i64, tpu.core_type = #tpu.core_type<tc>} {
    %c0 = arith.constant 0 : index
    %c0_0 = arith.constant 0 : index
    %0 = vector.load %arg0[%c0, %c0_0] : memref<32x16xbf16, #tpu.memory_space<vmem>>, vector<32x16xbf16>
    %c0_1 = arith.constant 0 : index
    %c0_2 = arith.constant 0 : index
    %1 = vector.load %arg1[%c0_1, %c0_2] : memref<32x32xbf16, #tpu.memory_space<vmem>>, vector<32x32xbf16>
    %c0_3 = arith.constant 0 : index
    %c0_4 = arith.constant 0 : index
    %2 = vector.load %arg4[%c0_3, %c0_4] : memref<64x16xbf16, #tpu.memory_space<vmem>>, vector<64x16xbf16>
    %c0_5 = arith.constant 0 : index
    %c0_6 = arith.constant 0 : index
    %3 = vector.load %arg5[%c0_5, %c0_6] : memref<8x32xbf16, #tpu.memory_space<vmem>>, vector<8x32xbf16>
    %cst = arith.constant dense<0.000000e+00> : vector<32x16xf32>
    %4 = tpu.matmul %1, %0, %cst {dimension_numbers = #tpu.dot_dimension_numbers<[1], [0], [0], [1], [0, 0, 1, 1], [], []>} : vector<32x32xbf16>, vector<32x16xbf16>, vector<32x16xf32> -> vector<32x16xf32>
    %5 = arith.truncf %4 : vector<32x16xf32> to vector<32x16xbf16>
    %c0_7 = arith.constant 0 : index
    %c0_8 = arith.constant 0 : index
    %c0_9 = arith.constant 0 : index
    %6 = vector.load %arg2[%c0_7, %c0_8, %c0_9] : memref<4x16x32xbf16, #tpu.memory_space<vmem>>, vector<1x16x32xbf16>
    %7 = vector.shape_cast %6 : vector<1x16x32xbf16> to vector<16x32xbf16>
    %cst_10 = arith.constant dense<0.000000e+00> : vector<32x32xf32>
    %8 = tpu.matmul %5, %7, %cst_10 {dimension_numbers = #tpu.dot_dimension_numbers<[1], [0], [0], [1], [0, 0, 1, 1], [], []>} : vector<32x16xbf16>, vector<16x32xbf16>, vector<32x32xf32> -> vector<32x32xf32>
    %cst_11 = arith.constant 0.000000e+00 : f32
    %9 = vector.broadcast %cst_11 : f32 to vector<32x32xf32>
    %10 = arith.maximumf %8, %9 : vector<32x32xf32>
    %11 = arith.truncf %10 : vector<32x32xf32> to vector<32x32xbf16>
    %c0_12 = arith.constant 0 : index
    %c0_13 = arith.constant 0 : index
    %c0_14 = arith.constant 0 : index
    %12 = vector.load %arg3[%c0_12, %c0_13, %c0_14] : memref<4x32x64xbf16, #tpu.memory_space<vmem>>, vector<1x32x64xbf16>
    %13 = vector.shape_cast %12 : vector<1x32x64xbf16> to vector<32x64xbf16>
    %cst_15 = arith.constant dense<0.000000e+00> : vector<32x64xf32>
    %14 = tpu.matmul %11, %13, %cst_15 {dimension_numbers = #tpu.dot_dimension_numbers<[1], [0], [0], [1], [0, 0, 1, 1], [], []>} : vector<32x32xbf16>, vector<32x64xbf16>, vector<32x64xf32> -> vector<32x64xf32>
    %cst_16 = arith.constant 0.000000e+00 : f32
    %15 = vector.broadcast %cst_16 : f32 to vector<32x64xf32>
    %16 = arith.maximumf %14, %15 : vector<32x64xf32>
    %17 = arith.truncf %16 : vector<32x64xf32> to vector<32x64xbf16>
    %cst_17 = arith.constant dense<0.000000e+00> : vector<32x16xf32>
    %18 = tpu.matmul %17, %2, %cst_17 {dimension_numbers = #tpu.dot_dimension_numbers<[1], [0], [0], [1], [0, 0, 1, 1], [], []>} : vector<32x64xbf16>, vector<64x16xbf16>, vector<32x16xf32> -> vector<32x16xf32>
    %19 = arith.truncf %18 : vector<32x16xf32> to vector<32x16xbf16>
    %cst_18 = arith.constant dense<0.000000e+00> : vector<32x16xf32>
    %20 = tpu.matmul %1, %19, %cst_18 {dimension_numbers = #tpu.dot_dimension_numbers<[1], [0], [0], [1], [0, 0, 1, 1], [], []>} : vector<32x32xbf16>, vector<32x16xbf16>, vector<32x16xf32> -> vector<32x16xf32>
    %21 = arith.truncf %20 : vector<32x16xf32> to vector<32x16xbf16>
    %c1 = arith.constant 1 : index
    %c0_19 = arith.constant 0 : index
    %c0_20 = arith.constant 0 : index
    %22 = vector.load %arg2[%c1, %c0_19, %c0_20] : memref<4x16x32xbf16, #tpu.memory_space<vmem>>, vector<1x16x32xbf16>
    %23 = vector.shape_cast %22 : vector<1x16x32xbf16> to vector<16x32xbf16>
    %cst_21 = arith.constant dense<0.000000e+00> : vector<32x32xf32>
    %24 = tpu.matmul %21, %23, %cst_21 {dimension_numbers = #tpu.dot_dimension_numbers<[1], [0], [0], [1], [0, 0, 1, 1], [], []>} : vector<32x16xbf16>, vector<16x32xbf16>, vector<32x32xf32> -> vector<32x32xf32>
    %cst_22 = arith.constant 0.000000e+00 : f32
    %25 = vector.broadcast %cst_22 : f32 to vector<32x32xf32>
    %26 = arith.maximumf %24, %25 : vector<32x32xf32>
    %27 = arith.truncf %26 : vector<32x32xf32> to vector<32x32xbf16>
    %c1_23 = arith.constant 1 : index
    %c0_24 = arith.constant 0 : index
    %c0_25 = arith.constant 0 : index
    %28 = vector.load %arg3[%c1_23, %c0_24, %c0_25] : memref<4x32x64xbf16, #tpu.memory_space<vmem>>, vector<1x32x64xbf16>
    %29 = vector.shape_cast %28 : vector<1x32x64xbf16> to vector<32x64xbf16>
    %cst_26 = arith.constant dense<0.000000e+00> : vector<32x64xf32>
    %30 = tpu.matmul %27, %29, %cst_26 {dimension_numbers = #tpu.dot_dimension_numbers<[1], [0], [0], [1], [0, 0, 1, 1], [], []>} : vector<32x32xbf16>, vector<32x64xbf16>, vector<32x64xf32> -> vector<32x64xf32>
    %cst_27 = arith.constant 0.000000e+00 : f32
    %31 = vector.broadcast %cst_27 : f32 to vector<32x64xf32>
    %32 = arith.maximumf %30, %31 : vector<32x64xf32>
    %33 = arith.truncf %32 : vector<32x64xf32> to vector<32x64xbf16>
    %cst_28 = arith.constant dense<0.000000e+00> : vector<32x16xf32>
    %34 = tpu.matmul %33, %2, %cst_28 {dimension_numbers = #tpu.dot_dimension_numbers<[1], [0], [0], [1], [0, 0, 1, 1], [], []>} : vector<32x64xbf16>, vector<64x16xbf16>, vector<32x16xf32> -> vector<32x16xf32>
    %35 = arith.truncf %34 : vector<32x16xf32> to vector<32x16xbf16>
    %cst_29 = arith.constant dense<0.000000e+00> : vector<32x16xf32>
    %36 = tpu.matmul %1, %35, %cst_29 {dimension_numbers = #tpu.dot_dimension_numbers<[1], [0], [0], [1], [0, 0, 1, 1], [], []>} : vector<32x32xbf16>, vector<32x16xbf16>, vector<32x16xf32> -> vector<32x16xf32>
    %37 = arith.truncf %36 : vector<32x16xf32> to vector<32x16xbf16>
    %c2 = arith.constant 2 : index
    %c0_30 = arith.constant 0 : index
    %c0_31 = arith.constant 0 : index
    %38 = vector.load %arg2[%c2, %c0_30, %c0_31] : memref<4x16x32xbf16, #tpu.memory_space<vmem>>, vector<1x16x32xbf16>
    %39 = vector.shape_cast %38 : vector<1x16x32xbf16> to vector<16x32xbf16>
    %cst_32 = arith.constant dense<0.000000e+00> : vector<32x32xf32>
    %40 = tpu.matmul %37, %39, %cst_32 {dimension_numbers = #tpu.dot_dimension_numbers<[1], [0], [0], [1], [0, 0, 1, 1], [], []>} : vector<32x16xbf16>, vector<16x32xbf16>, vector<32x32xf32> -> vector<32x32xf32>
    %cst_33 = arith.constant 0.000000e+00 : f32
    %41 = vector.broadcast %cst_33 : f32 to vector<32x32xf32>
    %42 = arith.maximumf %40, %41 : vector<32x32xf32>
    %43 = arith.truncf %42 : vector<32x32xf32> to vector<32x32xbf16>
    %c2_34 = arith.constant 2 : index
    %c0_35 = arith.constant 0 : index
    %c0_36 = arith.constant 0 : index
    %44 = vector.load %arg3[%c2_34, %c0_35, %c0_36] : memref<4x32x64xbf16, #tpu.memory_space<vmem>>, vector<1x32x64xbf16>
    %45 = vector.shape_cast %44 : vector<1x32x64xbf16> to vector<32x64xbf16>
    %cst_37 = arith.constant dense<0.000000e+00> : vector<32x64xf32>
    %46 = tpu.matmul %43, %45, %cst_37 {dimension_numbers = #tpu.dot_dimension_numbers<[1], [0], [0], [1], [0, 0, 1, 1], [], []>} : vector<32x32xbf16>, vector<32x64xbf16>, vector<32x64xf32> -> vector<32x64xf32>
    %cst_38 = arith.constant 0.000000e+00 : f32
    %47 = vector.broadcast %cst_38 : f32 to vector<32x64xf32>
    %48 = arith.maximumf %46, %47 : vector<32x64xf32>
    %49 = arith.truncf %48 : vector<32x64xf32> to vector<32x64xbf16>
    %cst_39 = arith.constant dense<0.000000e+00> : vector<32x16xf32>
    %50 = tpu.matmul %49, %2, %cst_39 {dimension_numbers = #tpu.dot_dimension_numbers<[1], [0], [0], [1], [0, 0, 1, 1], [], []>} : vector<32x64xbf16>, vector<64x16xbf16>, vector<32x16xf32> -> vector<32x16xf32>
    %51 = arith.truncf %50 : vector<32x16xf32> to vector<32x16xbf16>
    %cst_40 = arith.constant dense<0.000000e+00> : vector<32x16xf32>
    %52 = tpu.matmul %1, %51, %cst_40 {dimension_numbers = #tpu.dot_dimension_numbers<[1], [0], [0], [1], [0, 0, 1, 1], [], []>} : vector<32x32xbf16>, vector<32x16xbf16>, vector<32x16xf32> -> vector<32x16xf32>
    %53 = arith.truncf %52 : vector<32x16xf32> to vector<32x16xbf16>
    %c3 = arith.constant 3 : index
    %c0_41 = arith.constant 0 : index
    %c0_42 = arith.constant 0 : index
    %54 = vector.load %arg2[%c3, %c0_41, %c0_42] : memref<4x16x32xbf16, #tpu.memory_space<vmem>>, vector<1x16x32xbf16>
    %55 = vector.shape_cast %54 : vector<1x16x32xbf16> to vector<16x32xbf16>
    %cst_43 = arith.constant dense<0.000000e+00> : vector<32x32xf32>
    %56 = tpu.matmul %53, %55, %cst_43 {dimension_numbers = #tpu.dot_dimension_numbers<[1], [0], [0], [1], [0, 0, 1, 1], [], []>} : vector<32x16xbf16>, vector<16x32xbf16>, vector<32x32xf32> -> vector<32x32xf32>
    %cst_44 = arith.constant 0.000000e+00 : f32
    %57 = vector.broadcast %cst_44 : f32 to vector<32x32xf32>
    %58 = arith.maximumf %56, %57 : vector<32x32xf32>
    %59 = arith.truncf %58 : vector<32x32xf32> to vector<32x32xbf16>
    %c3_45 = arith.constant 3 : index
    %c0_46 = arith.constant 0 : index
    %c0_47 = arith.constant 0 : index
    %60 = vector.load %arg3[%c3_45, %c0_46, %c0_47] : memref<4x32x64xbf16, #tpu.memory_space<vmem>>, vector<1x32x64xbf16>
    %61 = vector.shape_cast %60 : vector<1x32x64xbf16> to vector<32x64xbf16>
    %cst_48 = arith.constant dense<0.000000e+00> : vector<32x64xf32>
    %62 = tpu.matmul %59, %61, %cst_48 {dimension_numbers = #tpu.dot_dimension_numbers<[1], [0], [0], [1], [0, 0, 1, 1], [], []>} : vector<32x32xbf16>, vector<32x64xbf16>, vector<32x64xf32> -> vector<32x64xf32>
    %cst_49 = arith.constant 0.000000e+00 : f32
    %63 = vector.broadcast %cst_49 : f32 to vector<32x64xf32>
    %64 = arith.maximumf %62, %63 : vector<32x64xf32>
    %65 = arith.truncf %64 : vector<32x64xf32> to vector<32x64xbf16>
    %cst_50 = arith.constant dense<0.000000e+00> : vector<8x64xf32>
    %66 = tpu.matmul %3, %65, %cst_50 {dimension_numbers = #tpu.dot_dimension_numbers<[1], [0], [0], [1], [0, 0, 1, 1], [], []>} : vector<8x32xbf16>, vector<32x64xbf16>, vector<8x64xf32> -> vector<8x64xf32>
    %67 = arith.truncf %66 : vector<8x64xf32> to vector<8x64xbf16>
    %cst_51 = arith.constant dense<0.000000e+00> : vector<8x16xf32>
    %68 = tpu.matmul %67, %2, %cst_51 {dimension_numbers = #tpu.dot_dimension_numbers<[1], [0], [0], [1], [0, 0, 1, 1], [], []>} : vector<8x64xbf16>, vector<64x16xbf16>, vector<8x16xf32> -> vector<8x16xf32>
    %69 = arith.truncf %68 : vector<8x16xf32> to vector<8x16xbf16>
    %c0_52 = arith.constant 0 : index
    %c0_53 = arith.constant 0 : index
    %70 = vector.load %arg6[%c0_52, %c0_53] : memref<16x128xbf16, #tpu.memory_space<vmem>>, vector<16x128xbf16>
    %cst_54 = arith.constant dense<0.000000e+00> : vector<8x128xf32>
    %71 = tpu.matmul %69, %70, %cst_54 {dimension_numbers = #tpu.dot_dimension_numbers<[1], [0], [0], [1], [0, 0, 1, 1], [], []>} : vector<8x16xbf16>, vector<16x128xbf16>, vector<8x128xf32> -> vector<8x128xf32>
    %c0_55 = arith.constant 0 : index
    %c0_56 = arith.constant 0 : index
    %72 = vector.load %arg7[%c0_55, %c0_56] : memref<1x128xf32, #tpu.memory_space<vmem>>, vector<1x128xf32>
    %73 = vector.broadcast %72 : vector<1x128xf32> to vector<8x128xf32>
    %74 = arith.addf %71, %73 : vector<8x128xf32>
    %cst_57 = arith.constant dense<0xFF800000> : vector<8xf32>
    %75 = vector.multi_reduction <maximumf>, %74, %cst_57 [1] : vector<8x128xf32> to vector<8xf32>
    %76 = vector.shape_cast %75 : vector<8xf32> to vector<8x1xf32>
    %77 = vector.broadcast %76 : vector<8x1xf32> to vector<8x128xf32>
    %78 = arith.subf %74, %77 : vector<8x128xf32>
    %79 = math.exp %78 : vector<8x128xf32>
    %cst_58 = arith.constant dense<0.000000e+00> : vector<8xf32>
    %80 = vector.multi_reduction <add>, %79, %cst_58 [1] : vector<8x128xf32> to vector<8xf32>
    %81 = vector.shape_cast %80 : vector<8xf32> to vector<8x1xf32>
    %82 = math.log %81 : vector<8x1xf32>
    %83 = arith.addf %76, %82 : vector<8x1xf32>
    %84 = vector.broadcast %83 : vector<8x1xf32> to vector<8x128xf32>
    %85 = arith.subf %74, %84 : vector<8x128xf32>
    %c0_59 = arith.constant 0 : index
    %c0_60 = arith.constant 0 : index
    %86 = vector.load %arg8[%c0_59, %c0_60] : memref<8x128xf32, #tpu.memory_space<vmem>>, vector<8x128xf32>
    tpu.vector_store %arg8[%c0_59, %c0_60], %85 {strides = array<i32>} : memref<8x128xf32, #tpu.memory_space<vmem>>, vector<8x128xf32>,
    return
  }
}

</mosaic_0001>

<bundles_post_ra>
// kernel: pgin_forward.1
= control target key start
LH: loop header
LB: loop body
LE: loop exit
PB: predicated region body
PF: predicated region fallthrough
CT: control target
= control target key end

     0   :  { %13 = vsyncpa [#allocation3], 0  ;;  %s1886_s0 = inlined_call_operand.vmem [shape: bf16[32,16], index: 0, kind: input, shape index: {}]   ;;  %s1887_s1 = inlined_call_operand.hbm [shape: bf16[32,32], index: 1, kind: input, shape index: {}]   ;;  %s1888_s2 = inlined_call_operand.hbm [shape: bf16[4,16,32], index: 2, kind: input, shape index: {}]   ;;  %s1889_s3 = inlined_call_operand.vmem [shape: bf16[4,32,64], index: 3, kind: input, shape index: {}]   ;;  %s1890_s4 = inlined_call_operand.vmem [shape: bf16[64,16], index: 4, kind: input, shape index: {}]   ;;  %s1891_s5 = inlined_call_operand.hbm [shape: bf16[8,32], index: 5, kind: input, shape index: {}]   ;;  %s1892_s6 = inlined_call_operand.vmem [shape: bf16[16,128], index: 6, kind: input, shape index: {}]   ;;  %s1893_s7 = inlined_call_operand.vmem [shape: f32[1,128], index: 7, kind: input, shape index: {}]   ;;  %s1894_s8 = inlined_call_operand.hbm [shape: f32[8,128], index: 8, kind: output, shape index: {}]  }
   0x1   :  { %14 = vsyncpa [#allocation6], 0 }
   0x2   :  { %15 = vsyncpa [#allocation4], 0  ;;  %s1689_s27 = smov [#allocation5]   ;;  %s1690_s29 = smov [#allocation2]  }
   0x3   :  { %s35_s28 = sshll.u32 %s1689_s27, 4  ;;  %s23_s30 = sshll.u32 %s1690_s29, 4  ;;  %s36_s28 = int_to_ptr.vmem [resolvable:$true] %s35_s28  ;;  %s24_s30 = int_to_ptr.vmem [resolvable:$true] %s23_s30 }
   0x4   :  { %s1611_s9 = scalar_lea.vmem %s36_s28, 512  ;;  %p1616_p1 = scmp.lt.s32.totalorder %s36_s28, %s36_s28 }
   0x5   :  { %p1612_p0 = scmp.ne.s32.totalorder %s36_s28, %s1611_s9  ;;  %p1617_p2 = scmp.lt.s32.totalorder %s1611_s9, %s1611_s9 }
   0x7   :  { %p1618_p3 = por %p1617_p2, %p1616_p1 }
   0x9   :  { %p1619_p4 = pnand %p1618_p3, %p1612_p0 }
   0xb   :  { %1622 = shalt.err (!%p1619_p4)
}
   0xc   :  { %s1691_s10 = smov 64   ;;  %s1692_s11 = smov 4  }
   0xd   :  { %41 = dma.hbm_to_vmem [thread:$0]  %s1888_s2, 512, %s36_s28, [#allocation6], %s1691_s10, %s1691_s10, %s1692_s11  }
   0xe   :  { %s1631_s14 = scalar_lea.vmem %s24_s30, 256  ;;  %p1636_p6 = scmp.lt.s32.totalorder %s24_s30, %s24_s30 }
   0xf   :  { %p1632_p5 = scmp.ne.s32.totalorder %s24_s30, %s1631_s14  ;;  %p1637_p7 = scmp.lt.s32.totalorder %s1631_s14, %s1631_s14 }
  0x11   :  { %p1638_p8 = por %p1637_p7, %p1636_p6 }
  0x13   :  { %p1639_p9 = pnand %p1638_p8, %p1632_p5 }
  0x15   :  { %1642 = shalt.err (!%p1639_p9)
}
  0x16   :  { %29 = dma.hbm_to_vmem [thread:$0]  %s1887_s1, 256, %s24_s30, [#allocation3], %s1691_s10, %s1691_s10, %s1692_s11  }
  0x17   :  { %s1693_s17 = smov [#allocation7]  }
  0x18   :  { %s52_s18 = sshll.u32 %s1693_s17, 4  ;;  %s53_s18 = int_to_ptr.vmem [resolvable:$true] %s52_s18 }
  0x19   :  { %s1651_s19 = scalar_lea.vmem %s53_s18, 64  ;;  %p1656_p11 = scmp.lt.s32.totalorder %s53_s18, %s53_s18 }
  0x1a   :  { %p1652_p10 = scmp.ne.s32.totalorder %s53_s18, %s1651_s19  ;;  %p1657_p12 = scmp.lt.s32.totalorder %s1651_s19, %s1651_s19 }
  0x1c   :  { %p1658_p13 = por %p1657_p12, %p1656_p11 }
  0x1e   :  { %p1659_p0 = pnand %p1658_p13, %p1652_p10 }
  0x20   :  { %1662 = shalt.err (!%p1659_p0)
}
  0x21   :  { %55 = dma.hbm_to_vmem [thread:$0]  %s1891_s5, 64, %s53_s18, [#allocation6]  }
  0x22   :  { %1683 = dma.done.wait [#allocation3], 256  }
  0x23   :  { %1684 = vsyncadd [#allocation3], 4294967040 }
  0x24   :  { %1685 = dma.done.wait [#allocation6], 576  }
  0x25   :  { %1686 = vsyncadd [#allocation6], 4294966720  ;;  %v1578_v0 = vld [vmem:[%s1886_s0 + $0x8] sm:$0xff]   ;;  %v1579_v1 = vld [vmem:[%s1886_s0] sm:$0xff]   ;;  %vm109_vm0 = vcmask 261120   ;;  %vm175_vm1 = vcmask 130048  }
  0x26   :  { %1420 = vmatprep.subr.bf16.mxu0 %v1578_v0  ;;  %v1757_v2 = vld [vmem:[#allocation2] sm:$0xff]   ;;  %v1761_v3 = vld [vmem:[#allocation2 + $0x8] sm:$0xff]   ;;  %v1582_v4 = vld [vmem:[#allocation5] sm:$0xff]   ;;  %vm338_vm2 = vcmask 523264   ;;  %vm1695_vm3 = vmmov 0  }
  0x27   :  { %1421 = vmatpush3.bf16.msra.mxu0 %v1578_v0  ;;  %1424 = vmatprep.mubr.msk.bf16.mxu0 %vm109_vm0, %v1757_v2  ;;  %v1583_v11 = vld [vmem:[%s1889_s3 + $0x8] sm:$0xff]   ;;  %v1584_v12 = vld [vmem:[%s1889_s3] sm:$0xff]   ;;  %v1776_v13 = vld [vmem:[%s1890_s4 + $0x18] sm:$0xff]  }
  0x28   :  { %1422 = vmatprep.subr.bf16.mxu0 %v1579_v1  ;;  %1428 = vmatprep.subr.bf16.mxu1 %v1582_v4  ;;  %v1787_v24 = vld [vmem:[%s1890_s4 + $0x10] sm:$0xff]   ;;  %v1794_v25 = vld [vmem:[%s1890_s4 + $0x8] sm:$0xff]   ;;  %v1801_v26 = vld [vmem:[%s1890_s4] sm:$0xff]  }
  0x29   :  { %1429 = vmatpush3.bf16.msra.mxu1 %v1582_v4  ;;  %v1589_v43 = vld [vmem:[#allocation5 + $0x8] sm:$0xff]   ;;  %v1591_v51 = vld [vmem:[%s1889_s3 + $0x10] sm:$0xff]  }
  0x2a   :  { %1434 = vmatprep.subr.bf16.mxu1 %v1583_v11  ;;  %v1590_v50 = vld [vmem:[%s1889_s3 + $0x18] sm:$0xff]  }
  0x2b   :  { %1423 = vmatpush3.bf16.msra.mxu0 %v1579_v1 }
  0x2c   :  { %1442 = vmatprep.subr.bf16.mxu0 %v1776_v13 }
  0x2e   :  { %1425 = vmatmul.mubr.msk.bf16.vlgmr.msra.gmra.mxu0 %vm109_vm0, %v1761_v3 }
  0x2f   :  { %1443 = vmatpush3.bf16.msra.mxu0 %v1776_v13 }
  0x30   :  { %1444 = vmatprep.subr.bf16.mxu0 %v1787_v24 }
  0x33   :  { %1445 = vmatpush3.bf16.msra.mxu0 %v1787_v24 }
  0x34   :  { %1446 = vmatprep.subr.bf16.mxu0 %v1794_v25 }
  0x37   :  { %1447 = vmatpush3.bf16.msra.mxu0 %v1794_v25 }
  0x38   :  { %1448 = vmatprep.subr.bf16.mxu0 %v1801_v26 }
  0x3b   :  { %1449 = vmatpush3.bf16.msra.mxu0 %v1801_v26 }
  0x3c   :  { %1468 = vmatprep.subr.bf16.mxu0 %v1590_v50 }
  0xee   :  { %v1426_v5 = vpop.f32.mrf.mxu0 }
  0xf0   :  { %v150_v6 = vpop.f32.mrf.mxu0 }
  0xf2   :  { %v1427_v7 = vpop.f32.mrf.mxu0 }
  0xf3   :  { %v166_v10 = vpack.c.bf16 %v1427_v7, %v1426_v5 }
  0xf4   :  { %v153_v8 = vpop.f32.mrf.mxu0 }
  0xf5   :  { %v165_v9 = vpack.c.bf16 %v153_v8, %v150_v6 }
  0xf7   :  { %1430 = vmatprep.mubr.msk.bf16.mxu1 %vm175_vm1, %v165_v9 }
  0xf8   :  { %1431 = vmatmul.mubr.msk.bf16.vlgmr.msra.gmra.mxu1 %vm175_vm1, %v166_v10 }
  0xf9   :  { %1435 = vmatpush3.bf16.msra.mxu1 %v1583_v11 }
  0xfa   :  { %1436 = vmatprep.subr.bf16.mxu1 %v1584_v12 }
  0xfd   :  { %1437 = vmatpush3.bf16.msra.mxu1 %v1584_v12 }
 0x1b8   :  { %v1432_v14 = vpop.f32.mrf.mxu1 }
 0x1b9   :  { %v233_v21 = vmax.f32 %v1432_v14, 0.0 }
 0x1ba   :  { %v216_v15 = vpop.f32.mrf.mxu1 }
 0x1bb   :  { %v231_v19 = vmax.f32 %v216_v15, 0.0 }
 0x1bc   :  { %v1433_v16 = vpop.f32.mrf.mxu1 }
 0x1bd   :  { %v234_v17 = vmax.f32 %v1433_v16, 0.0 }
 0x1be   :  { %v219_v18 = vpop.f32.mrf.mxu1 }
 0x1bf   :  { %v232_v20 = vmax.f32 %v219_v18, 0.0  ;;  %v236_v23 = vpack.c.bf16 %v234_v17, %v233_v21  ;;  %v1592_v17 = vld [vmem:[#allocation5 + $0x10] sm:$0xff]  }
 0x1c1   :  { %v235_v22 = vpack.c.bf16 %v232_v20, %v231_v19 }
 0x1c3   :  { %1438 = vmatprep.mubr.msk.bf16.mxu1 %vm109_vm0, %v235_v22 }
 0x1c4   :  { %1439 = vmatmul.mubr.msk.bf16.vlgmr.msra.gmra.mxu1 %vm109_vm0, %v236_v23 }
 0x1c5   :  { %1458 = vmatprep.mubr.msk.bf16.mxu1 %vm109_vm0, %v1757_v2 }
 0x284   :  { %v1440_v27 = vpop.f32.mrf.mxu1 }
 0x285   :  { %v310_v34 = vmax.f32 %v1440_v27, 0.0  ;;  %v1593_v27 = vld [vmem:[%s1889_s3 + $0x28] sm:$0xff]  }
 0x286   :  { %v293_v28 = vpop.f32.mrf.mxu1 }
 0x287   :  { %v308_v32 = vmax.f32 %v293_v28, 0.0  ;;  %v1594_v28 = vld [vmem:[%s1889_s3 + $0x20] sm:$0xff]  }
 0x288   :  { %v1441_v29 = vpop.f32.mrf.mxu1 }
 0x289   :  { %v311_v30 = vmax.f32 %v1441_v29, 0.0 }
 0x28a   :  { %v296_v31 = vpop.f32.mrf.mxu1 }
 0x28b   :  { %v309_v33 = vmax.f32 %v296_v31, 0.0  ;;  %v313_v36 = vpack.c.bf16 %v311_v30, %v310_v34 }
 0x28d   :  { %v312_v35 = vpack.c.bf16 %v309_v33, %v308_v32 }
 0x28f   :  { %1450 = vmatprep.mubr.msk.bf16.mxu0 %vm338_vm2, %v312_v35 }
 0x290   :  { %1451 = vmatmul.mubr.msk.bf16.vlgmr.msra.gmra.mxu0 %vm338_vm2, %v313_v36 }
 0x291   :  { %1469 = vmatpush3.bf16.msra.mxu0 %v1590_v50 }
 0x292   :  { %1470 = vmatprep.subr.bf16.mxu0 %v1591_v51 }
 0x295   :  { %1471 = vmatpush3.bf16.msra.mxu0 %v1591_v51 }
 0x350   :  { %v1452_v37 = vpop.f32.mrf.mxu0 }
 0x352   :  { %v379_v38 = vpop.f32.mrf.mxu0 }
 0x354   :  { %v1453_v39 = vpop.f32.mrf.mxu0 }
 0x355   :  { %v395_v40 = vpack.c.bf16 %v1453_v39, %v1452_v37 }
 0x356   :  { %v382_v41 = vpop.f32.mrf.mxu0 }
 0x357   :  { %v394_v42 = vpack.c.bf16 %v382_v41, %v379_v38  ;;  %1454 = vmatprep.subr.bf16.mxu1 %v395_v40 }
 0x358   :  { %1455 = vmatpush3.bf16.msra.mxu1 %v395_v40 }
 0x359   :  { %1456 = vmatprep.subr.bf16.mxu1 %v394_v42 }
 0x35c   :  { %1457 = vmatpush3.bf16.msra.mxu1 %v394_v42 }
 0x35d   :  { %1462 = vmatprep.subr.bf16.mxu1 %v1589_v43 }
 0x35f   :  { %1459 = vmatmul.mubr.msk.bf16.vlgmr.msra.gmra.mxu1 %vm109_vm0, %v1761_v3 }
 0x360   :  { %1463 = vmatpush3.bf16.msra.mxu1 %v1589_v43 }
 0x361   :  { %1476 = vmatprep.subr.bf16.mxu1 %v1776_v13 }
 0x41f   :  { %v1460_v44 = vpop.f32.mrf.mxu1 }
 0x421   :  { %v430_v45 = vpop.f32.mrf.mxu1 }
 0x423   :  { %v1461_v46 = vpop.f32.mrf.mxu1 }
 0x424   :  { %v446_v49 = vpack.c.bf16 %v1461_v46, %v1460_v44 }
 0x425   :  { %v433_v47 = vpop.f32.mrf.mxu1 }
 0x426   :  { %v445_v48 = vpack.c.bf16 %v433_v47, %v430_v45 }
 0x428   :  { %1464 = vmatprep.mubr.msk.bf16.mxu1 %vm175_vm1, %v445_v48 }
 0x429   :  { %1465 = vmatmul.mubr.msk.bf16.vlgmr.msra.gmra.mxu1 %vm175_vm1, %v446_v49 }
 0x42a   :  { %1477 = vmatpush3.bf16.msra.mxu1 %v1776_v13 }
 0x42b   :  { %1478 = vmatprep.subr.bf16.mxu1 %v1787_v24 }
 0x42e   :  { %1479 = vmatpush3.bf16.msra.mxu1 %v1787_v24 }
 0x42f   :  { %1480 = vmatprep.subr.bf16.mxu1 %v1794_v25 }
 0x432   :  { %1481 = vmatpush3.bf16.msra.mxu1 %v1794_v25 }
 0x433   :  { %1482 = vmatprep.subr.bf16.mxu1 %v1801_v26 }
 0x436   :  { %1483 = vmatpush3.bf16.msra.mxu1 %v1801_v26 }
 0x437   :  { %1502 = vmatprep.subr.bf16.mxu1 %v1593_v27 }
 0x4e9   :  { %v1466_v52 = vpop.f32.mrf.mxu1 }
 0x4ea   :  { %v513_v59 = vmax.f32 %v1466_v52, 0.0 }
 0x4eb   :  { %v496_v53 = vpop.f32.mrf.mxu1 }
 0x4ec   :  { %v511_v57 = vmax.f32 %v496_v53, 0.0 }
 0x4ed   :  { %v1467_v54 = vpop.f32.mrf.mxu1 }
 0x4ee   :  { %v514_v55 = vmax.f32 %v1467_v54, 0.0  ;;  %v1595_v54 = vld [vmem:[#allocation5 + $0x18] sm:$0xff]  }
 0x4ef   :  { %v499_v56 = vpop.f32.mrf.mxu1 }
 0x4f0   :  { %v512_v58 = vmax.f32 %v499_v56, 0.0  ;;  %v516_v61 = vpack.c.bf16 %v514_v55, %v513_v59 }
 0x4f2   :  { %v515_v60 = vpack.c.bf16 %v512_v58, %v511_v57 }
 0x4f4   :  { %1472 = vmatprep.mubr.msk.bf16.mxu0 %vm109_vm0, %v515_v60 }
 0x4f5   :  { %1473 = vmatmul.mubr.msk.bf16.vlgmr.msra.gmra.mxu0 %vm109_vm0, %v516_v61  ;;  %v1596_v61 = vld [vmem:[%s1889_s3 + $0x38] sm:$0xff]  }
 0x4f6   :  { %1492 = vmatprep.mubr.msk.bf16.mxu0 %vm109_vm0, %v1757_v2 }
 0x5b5   :  { %v1474_v62 = vpop.f32.mrf.mxu0 }
 0x5b6   :  { %v591_v7 = vmax.f32 %v1474_v62, 0.0 }
 0x5b7   :  { %v574_v63 = vpop.f32.mrf.mxu0 }
 0x5b8   :  { %v589_v5 = vmax.f32 %v574_v63, 0.0 }
 0x5b9   :  { %v1475_v0 = vpop.f32.mrf.mxu0 }
 0x5ba   :  { %v592_v1 = vmax.f32 %v1475_v0, 0.0 }
 0x5bb   :  { %v577_v4 = vpop.f32.mrf.mxu0 }
 0x5bc   :  { %v590_v6 = vmax.f32 %v577_v4, 0.0  ;;  %v594_v9 = vpack.c.bf16 %v592_v1, %v591_v7 }
 0x5be   :  { %v593_v8 = vpack.c.bf16 %v590_v6, %v589_v5 }
 0x5c0   :  { %1484 = vmatprep.mubr.msk.bf16.mxu1 %vm338_vm2, %v593_v8 }
 0x5c1   :  { %1485 = vmatmul.mubr.msk.bf16.vlgmr.msra.gmra.mxu1 %vm338_vm2, %v594_v9 }
 0x5c2   :  { %1503 = vmatpush3.bf16.msra.mxu1 %v1593_v27 }
 0x5c3   :  { %1504 = vmatprep.subr.bf16.mxu1 %v1594_v28 }
 0x5c6   :  { %1505 = vmatpush3.bf16.msra.mxu1 %v1594_v28 }
 0x681   :  { %v1486_v10 = vpop.f32.mrf.mxu1 }
 0x683   :  { %v635_v11 = vpop.f32.mrf.mxu1 }
 0x685   :  { %v1487_v12 = vpop.f32.mrf.mxu1 }
 0x686   :  { %v651_v14 = vpack.c.bf16 %v1487_v12, %v1486_v10  ;;  %v1694_v10 = vmov 0.0  }
 0x687   :  { %v638_v15 = vpop.f32.mrf.mxu1 }
 0x688   :  { %v650_v16 = vpack.c.bf16 %v638_v15, %v635_v11  ;;  %1488 = vmatprep.subr.bf16.mxu0 %v651_v14 }
 0x689   :  { %1489 = vmatpush3.bf16.msra.mxu0 %v651_v14 }
 0x68a   :  { %1490 = vmatprep.subr.bf16.mxu0 %v650_v16 }
 0x68d   :  { %1491 = vmatpush3.bf16.msra.mxu0 %v650_v16 }
 0x68e   :  { %1496 = vmatprep.subr.bf16.mxu0 %v1592_v17 }
 0x690   :  { %1493 = vmatmul.mubr.msk.bf16.vlgmr.msra.gmra.mxu0 %vm109_vm0, %v1761_v3 }
 0x691   :  { %1497 = vmatpush3.bf16.msra.mxu0 %v1592_v17 }
 0x692   :  { %1510 = vmatprep.subr.bf16.mxu0 %v1776_v13 }
 0x750   :  { %v1494_v18 = vpop.f32.mrf.mxu0 }
 0x752   :  { %v686_v19 = vpop.f32.mrf.mxu0 }
 0x754   :  { %v1495_v20 = vpop.f32.mrf.mxu0 }
 0x755   :  { %v702_v23 = vpack.c.bf16 %v1495_v20, %v1494_v18  ;;  %v86_v20 = vld [vmem:[#allocation7] sm:$0xf] }
 0x756   :  { %v689_v21 = vpop.f32.mrf.mxu0 }
 0x757   :  { %v701_v22 = vpack.c.bf16 %v689_v21, %v686_v19 }
 0x759   :  { %1498 = vmatprep.mubr.msk.bf16.mxu0 %vm175_vm1, %v701_v22 }
 0x75a   :  { %1499 = vmatmul.mubr.msk.bf16.vlgmr.msra.gmra.mxu0 %vm175_vm1, %v702_v23 }
 0x75b   :  { %1511 = vmatpush3.bf16.msra.mxu0 %v1776_v13 }
 0x75c   :  { %1512 = vmatprep.subr.bf16.mxu0 %v1787_v24 }
 0x75f   :  { %1513 = vmatpush3.bf16.msra.mxu0 %v1787_v24 }
 0x760   :  { %1514 = vmatprep.subr.bf16.mxu0 %v1794_v25 }
 0x763   :  { %1515 = vmatpush3.bf16.msra.mxu0 %v1794_v25 }
 0x764   :  { %1516 = vmatprep.subr.bf16.mxu0 %v1801_v26 }
 0x767   :  { %1517 = vmatpush3.bf16.msra.mxu0 %v1801_v26 }
 0x768   :  { %1536 = vmatprep.subr.bf16.mxu0 %v1596_v61 }
 0x81a   :  { %v1500_v29 = vpop.f32.mrf.mxu0 }
 0x81b   :  { %v769_v36 = vmax.f32 %v1500_v29, 0.0 }
 0x81c   :  { %v752_v30 = vpop.f32.mrf.mxu0 }
 0x81d   :  { %v767_v34 = vmax.f32 %v752_v30, 0.0 }
 0x81e   :  { %v1501_v31 = vpop.f32.mrf.mxu0 }
 0x81f   :  { %v770_v32 = vmax.f32 %v1501_v31, 0.0 }
 0x820   :  { %v755_v33 = vpop.f32.mrf.mxu0 }
 0x821   :  { %v768_v35 = vmax.f32 %v755_v33, 0.0  ;;  %v772_v38 = vpack.c.bf16 %v770_v32, %v769_v36  ;;  %v1345_v33 = vld [vmem:[%s1893_s7] ss:$0 sm:$0xff] }
 0x823   :  { %v771_v37 = vpack.c.bf16 %v768_v35, %v767_v34 }
 0x825   :  { %1506 = vmatprep.mubr.msk.bf16.mxu1 %vm109_vm0, %v771_v37 }
 0x826   :  { %1507 = vmatmul.mubr.msk.bf16.vlgmr.msra.gmra.mxu1 %vm109_vm0, %v772_v38 }
 0x827   :  { %1526 = vmatprep.mubr.msk.bf16.mxu1 %vm109_vm0, %v1757_v2 }
 0x8e6   :  { %v1508_v39 = vpop.f32.mrf.mxu1 }
 0x8e7   :  { %v847_v46 = vmax.f32 %v1508_v39, 0.0 }
 0x8e8   :  { %v830_v40 = vpop.f32.mrf.mxu1 }
 0x8e9   :  { %v845_v44 = vmax.f32 %v830_v40, 0.0 }
 0x8ea   :  { %v1509_v41 = vpop.f32.mrf.mxu1 }
 0x8eb   :  { %v848_v42 = vmax.f32 %v1509_v41, 0.0 }
 0x8ec   :  { %v833_v43 = vpop.f32.mrf.mxu1 }
 0x8ed   :  { %v846_v45 = vmax.f32 %v833_v43, 0.0  ;;  %v850_v48 = vpack.c.bf16 %v848_v42, %v847_v46 }
 0x8ef   :  { %v849_v47 = vpack.c.bf16 %v846_v45, %v845_v44 }
 0x8f1   :  { %1518 = vmatprep.mubr.msk.bf16.mxu0 %vm338_vm2, %v849_v47 }
 0x8f2   :  { %1519 = vmatmul.mubr.msk.bf16.vlgmr.msra.gmra.mxu0 %vm338_vm2, %v850_v48 }
 0x8f3   :  { %1537 = vmatpush3.bf16.msra.mxu0 %v1596_v61 }
 0x9b2   :  { %v1520_v49 = vpop.f32.mrf.mxu0 }
 0x9b4   :  { %v891_v50 = vpop.f32.mrf.mxu0 }
 0x9b6   :  { %v1521_v51 = vpop.f32.mrf.mxu0 }
 0x9b7   :  { %v907_v52 = vpack.c.bf16 %v1521_v51, %v1520_v49 }
 0x9b8   :  { %v894_v53 = vpop.f32.mrf.mxu0 }
 0x9b9   :  { %v906_v2 = vpack.c.bf16 %v894_v53, %v891_v50  ;;  %1522 = vmatprep.subr.bf16.mxu1 %v907_v52 }
 0x9ba   :  { %1523 = vmatpush3.bf16.msra.mxu1 %v907_v52 }
 0x9bb   :  { %1524 = vmatprep.subr.bf16.mxu1 %v906_v2 }
 0x9be   :  { %1525 = vmatpush3.bf16.msra.mxu1 %v906_v2 }
 0x9bf   :  { %1530 = vmatprep.subr.bf16.mxu1 %v1595_v54 }
 0x9c1   :  { %1527 = vmatmul.mubr.msk.bf16.vlgmr.msra.gmra.mxu1 %vm109_vm0, %v1761_v3  ;;  %v1597_v3 = vld [vmem:[%s1889_s3 + $0x30] sm:$0xff]  }
 0x9c2   :  { %1531 = vmatpush3.bf16.msra.mxu1 %v1595_v54  ;;  %1538 = vmatprep.subr.bf16.mxu0 %v1597_v3 }
 0x9c3   :  { %1539 = vmatpush3.bf16.msra.mxu0 %v1597_v3  ;;  %1544 = vmatprep.subr.bf16.mxu1 %v1694_v10 }
 0x9c4   :  { %1552 = vmatprep.subr.bf16.mxu0 %v1694_v10 }
 0xa81   :  { %v1528_v55 = vpop.f32.mrf.mxu1 }
 0xa83   :  { %v942_v56 = vpop.f32.mrf.mxu1 }
 0xa85   :  { %v1529_v57 = vpop.f32.mrf.mxu1 }
 0xa86   :  { %v958_v60 = vpack.c.bf16 %v1529_v57, %v1528_v55 }
 0xa87   :  { %v945_v58 = vpop.f32.mrf.mxu1 }
 0xa88   :  { %v957_v59 = vpack.c.bf16 %v945_v58, %v942_v56 }
 0xa8a   :  { %1532 = vmatprep.mubr.msk.bf16.mxu1 %vm175_vm1, %v957_v59 }
 0xa8b   :  { %1533 = vmatmul.mubr.msk.bf16.vlgmr.msra.gmra.mxu1 %vm175_vm1, %v958_v60 }
 0xa8c   :  { %1548 = vmatprep.mubr.msk.bf16.mxu1 %vm1695_vm3, %v1694_v10 }
 0xb4b   :  { %v1534_v62 = vpop.f32.mrf.mxu1 }
 0xb4c   :  { %v1025_v7 = vmax.f32 %v1534_v62, 0.0 }
 0xb4d   :  { %v1008_v63 = vpop.f32.mrf.mxu1 }
 0xb4e   :  { %v1023_v5 = vmax.f32 %v1008_v63, 0.0 }
 0xb4f   :  { %v1535_v0 = vpop.f32.mrf.mxu1 }
 0xb50   :  { %v1026_v1 = vmax.f32 %v1535_v0, 0.0 }
 0xb51   :  { %v1011_v4 = vpop.f32.mrf.mxu1 }
 0xb52   :  { %v1024_v6 = vmax.f32 %v1011_v4, 0.0  ;;  %v1028_v9 = vpack.c.bf16 %v1026_v1, %v1025_v7 }
 0xb54   :  { %v1027_v8 = vpack.c.bf16 %v1024_v6, %v1023_v5 }
 0xb56   :  { %1540 = vmatprep.mubr.msk.bf16.mxu0 %vm109_vm0, %v1027_v8 }
 0xb57   :  { %1541 = vmatmul.mubr.msk.bf16.vlgmr.msra.gmra.mxu0 %vm109_vm0, %v1028_v9 }
 0xb58   :  { %1553 = vmatpush3.bf16.msra.mxu0 %v1776_v13  ;;  %1560 = vmatprep.mubr.msk.bf16.mxu0 %vm1695_vm3, %v1694_v10 }
 0xb59   :  { %1554 = vmatprep.subr.bf16.mxu0 %v1694_v10 }
 0xb5c   :  { %1555 = vmatpush3.bf16.msra.mxu0 %v1787_v24 }
 0xb5d   :  { %1556 = vmatprep.subr.bf16.mxu0 %v1694_v10 }
 0xb60   :  { %1557 = vmatpush3.bf16.msra.mxu0 %v1794_v25  ;;  %v1598_v25 = vld [vmem:[%s1892_s6] sm:$0xff]   ;;  %s1696_s6 = smov [#allocation8]  }
 0xb61   :  { %1558 = vmatprep.subr.bf16.mxu0 %v1694_v10  ;;  %s1271_s0 = sshll.u32 %s1696_s6, 4  ;;  %s1272_s0 = int_to_ptr.vmem [resolvable:$true] %s1271_s0 }
 0xb62   :  { %s1663_s7 = scalar_lea.vmem %s1272_s0, 128  ;;  %p1668_p2 = scmp.lt.s32.totalorder %s1272_s0, %s1272_s0 }
 0xb63   :  { %p1664_p1 = scmp.ne.s32.totalorder %s1272_s0, %s1663_s7  ;;  %p1669_p3 = scmp.lt.s32.totalorder %s1663_s7, %s1663_s7 }
 0xb64   :  { %1559 = vmatpush3.bf16.msra.mxu0 %v1801_v26 }
 0xb65   :  { %p1670_p4 = por %p1669_p3, %p1668_p2 }
 0xb67   :  { %p1671_p5 = pnand %p1670_p4, %p1664_p1 }
 0xc17   :  { %v1542_v11 = vpop.f32.mrf.mxu0 }
 0xc18   :  { %v1103_v15 = vmax.f32 %v1542_v11, 0.0 }
 0xc19   :  { %v1086_v12 = vpop.f32.mrf.mxu0 }
 0xc1a   :  { %v1101_v24 = vmax.f32 %v1086_v12, 0.0 }
 0xc1b   :  { %v1543_v14 = vpop.f32.mrf.mxu0 }
 0xc1c   :  { %v1104_v16 = vmax.f32 %v1543_v14, 0.0 }
 0xc1d   :  { %v1089_v13 = vpop.f32.mrf.mxu0 }
 0xc1e   :  { %v1106_v17 = vpack.c.bf16 %v1104_v16, %v1103_v15  ;;  %v1102_v18 = vmax.f32 %v1089_v13, 0.0 }
 0xc20   :  { %1545 = vmatpush3.bf16.msra.mxu1 %v1106_v17  ;;  %v1105_v19 = vpack.c.bf16 %v1102_v18, %v1101_v24 }
 0xc21   :  { %1546 = vmatprep.subr.bf16.mxu1 %v1694_v10 }
 0xc24   :  { %1547 = vmatpush3.bf16.msra.mxu1 %v1105_v19 }
 0xc25   :  { %1564 = vmatprep.subr.bf16.mxu1 %v1694_v10 }
 0xc27   :  { %1549 = vmatmul.mubr.msk.bf16.vlgmr.msra.gmra.mxu1 %vm109_vm0, %v86_v20 }
 0xc28   :  { %1566 = vmatprep.mubr.msk.bf16.mxu1 %vm1695_vm3, %v1694_v10  ;;  %1565 = vmatpush3.bf16.msra.mxu1 %v1598_v25 }
 0xce7   :  { %v1144_v26 = vpop.f32.mrf.mxu1 }
 0xce8   :  { %v1150_v21 = vpack.c.bf16 %v1144_v26, %v1144_v26 }
 0xce9   :  { %v1550_v22 = vpop.f32.mrf.mxu1 }
 0xcea   :  { %1561 = vmatmul.mubr.msk.bf16.vlgmr.msra.gmra.mxu0 %vm338_vm2, %v1150_v21 }
 0xceb   :  { %v1147_v23 = vpop.f32.mrf.mxu1 }
 0xced   :  { %v1551_v27 = vpop.f32.mrf.mxu1 }
 0xdaa   :  { %v1188_v28 = vpop.f32.mrf.mxu0 }
 0xdab   :  { %v1194_v29 = vpack.c.bf16 %v1188_v28, %v1188_v28 }
 0xdac   :  { %v1562_v30 = vpop.f32.mrf.mxu0 }
 0xdad   :  { %1567 = vmatmul.mubr.msk.bf16.vlgmr.msra.gmra.mxu1 %vm175_vm1, %v1194_v29 }
 0xdae   :  { %v1191_v31 = vpop.f32.mrf.mxu0 }
 0xdb0   :  { %v1563_v32 = vpop.f32.mrf.mxu0 }
 0xe6d   :  { %v1247_v34 = vpop.f32.mrf.mxu1 }
 0xe6e   :  { %v1248_v35 = vadd.f32 %v1345_v33, %v1247_v34 }
 0xe6f   :  { %v1568_v36 = vpop.f32.mrf.mxu1 }
 0xe70   :  { %1253 = vmax.xlane.f32.xlu0 %v1248_v35 }
 0xe71   :  { %v1250_v37 = vpop.f32.mrf.mxu1 }
 0xe73   :  { %v1569_v38 = vpop.f32.mrf.mxu1 }
 0xef9   :  { %v1254_v39 = vpop.xlane.xlu0 %1253 }
 0xefa   :  { %v1255_v40 = vsub.f32 %v1248_v35, %v1254_v39 }
 0xefc   :  { %v1256_v41 = vmul.f32 1.442695, %v1255_v40 }
 0xefe   :  { %1599 = vpow2.f32 %v1256_v41 }
 0xf0b   :  { %v1600_v42 = vpop.eup %1599 }
 0xf0c   :  { %1258 = vadd.xlane.f32.xlu0 %v1600_v42 }
 0xf95   :  { %v1259_v43 = vpop.xlane.xlu0 %1258 }
 0xf96   :  { %1601 = vlog2.f32 %v1259_v43 }
 0xfa3   :  { %v1602_v44 = vpop.eup %1601 }
 0xfa4   :  { %v1261_v45 = vmul.f32 0.6931472, %v1602_v44 }
 0xfa6   :  { %v1262_v46 = vadd.f32 %v1261_v45, %v1254_v39 }
 0xfa8   :  { %v1263_v47 = vsub.f32 %v1248_v35, %v1262_v46 }
 0xfaa   :  { %1264 = vst [vmem:[#allocation8] sm:$0xff] %v1263_v47 }
 0xfab   :  { %1674 = shalt.err (!%p1671_p5)
}
 0xfac   :  { %1274 = dma.vmem_to_hbm [thread:$0]  %s1272_s0, 128, %s1894_s8, [#allocation4]  }
 0xfad   :  { %1687 = dma.done.wait [#allocation4], 128  }
 0xfae   :  { %1688 = vsyncadd [#allocation4], 4294967168 }
 0xfaf   :  { %1278 = vsyncpa [#allocation3], 1 }
 0xfb0   :  { %1279 = vsyncpa [#allocation6], 1 }
 0xfb1   :  { %1280 = vsyncpa [#allocation4], 1 }

</bundles_post_ra>
